<compile_context>
chip_gen: v7x
topology: tpu7x:2x2x1
jax: 0.10.0
libtpu: 0.0.40
codegen_flags: <defaults>
</compile_context>

<pallas_src>
import jax
import jax.numpy as jnp
from jax.experimental import pallas as pl
from jax.experimental.pallas import tpu as pltpu


def mlp_critic_kernel(xT_ref, w1_ref, b1_ref, w2_ref, b2_ref, oT_ref):
    # xT_ref : [obs_size, TB]   bf16   (streamed tile, batch on lanes)
    # w1_ref : [hidden, obs_size] bf16 (resident)
    # b1_ref : [hidden, 1]      f32    (resident)
    # w2_ref : [n_actions, hidden] bf16 (resident)
    # b2_ref : [n_actions, 1]   f32    (resident)
    # oT_ref : [n_actions, TB]  f32    (lane-dense output tile)

    # h^T = ReLU(W1 @ x^T + b1)  -- MXU matmul with f32 accumulation,
    # f32 epilogue on the VPU (bias broadcasts over the lane axis).
    h = jnp.dot(w1_ref[...], xT_ref[...], preferred_element_type=jnp.float32)
    h = jnp.maximum(h + b1_ref[...], 0.0)

    # out^T = W2 @ h^T + b2  -- feed bf16 to the MXU, accumulate in f32.
    out = jnp.dot(w2_ref[...], h.astype(w2_ref.dtype),
                  preferred_element_type=jnp.float32)
    oT_ref[...] = (out + b2_ref[...]).astype(oT_ref.dtype)


def mlp_critic_forward(obs, w1, b1, w2, b2, *, tb=512):
    """obs: [B, obs_size] f32; weights in PyTorch layout (W: [out, in], b: [out]).

    Returns [B, n_actions] f32.

    `tb` is the batch tile (rows per grid step, rounded to a multiple of 128).
    Per-step live VMEM is tiny (a few hundred KiB even at tb=8192), so large
    tiles are safe on v5e (16 MiB scoped), v6e (128 MiB) and v7x (64 MiB).
    """
    B, obs_size = obs.shape
    hidden = w1.shape[0]
    n_actions = w2.shape[0]

    # Lane-aligned batch tile; don't make it bigger than the (padded) batch.
    tb = max(128, min((tb // 128) * 128, pl.cdiv(B, 128) * 128))
    b_pad = pl.cdiv(B, tb) * tb
    grid = (b_pad // tb,)

    # Feature-major, lane-dense operands (batch on the 128-lane axis).
    # Pad the batch up to a tile multiple so no masked last block is needed.
    obs_t = jnp.zeros((obs_size, b_pad), jnp.bfloat16)
    obs_t = obs_t.at[:, :B].set(obs.T.astype(jnp.bfloat16))
    w1_bf = w1.astype(jnp.bfloat16)
    w2_bf = w2.astype(jnp.bfloat16)
    b1_c = b1.reshape(hidden, 1).astype(jnp.float32)
    b2_c = b2.reshape(n_actions, 1).astype(jnp.float32)

    out_t = pl.pallas_call(
        mlp_critic_kernel,
        out_shape=jax.ShapeDtypeStruct((n_actions, b_pad), jnp.float32),
        grid=grid,
        in_specs=[
            pl.BlockSpec((obs_size, tb), lambda i: (0, i)),       # streamed obs^T tile
            pl.BlockSpec((hidden, obs_size), lambda i: (0, 0)),   # resident W1
            pl.BlockSpec((hidden, 1), lambda i: (0, 0)),          # resident b1
            pl.BlockSpec((n_actions, hidden), lambda i: (0, 0)),  # resident W2
            pl.BlockSpec((n_actions, 1), lambda i: (0, 0)),       # resident b2
        ],
        out_specs=pl.BlockSpec((n_actions, tb), lambda i: (0, i)),
        compiler_params=pltpu.CompilerParams(
            dimension_semantics=("parallel",),                    # v7x: shard over 2 TCs
        ),
    )(obs_t, w1_bf, b1_c, w2_bf, b2_c)

    # Back to batch-major [B, n_actions]; drop batch padding.
    return out_t[:, :B].T


def init_params(key, obs_size, n_actions, hidden_size=32):
    """PyTorch nn.Linear default init (U(-1/sqrt(fan_in), +)), PyTorch layout."""
    k1, k2, k3, k4 = jax.random.split(key, 4)
    lim1 = 1.0 / jnp.sqrt(jnp.float32(obs_size))
    lim2 = 1.0 / jnp.sqrt(jnp.float32(hidden_size))
    w1 = jax.random.uniform(k1, (hidden_size, obs_size), jnp.float32, -lim1, lim1)
    b1 = jax.random.uniform(k2, (hidden_size,), jnp.float32, -lim1, lim1)
    w2 = jax.random.uniform(k3, (n_actions, hidden_size), jnp.float32, -lim2, lim2)
    b2 = jax.random.uniform(k4, (n_actions,), jnp.float32, -lim2, lim2)
    return w1, b1, w2, b2


if __name__ == "__main__":
    obs_size, n_actions, hidden_size = 16, 4, 32
    batch = 8
    # NOTE: at batch=8 the fixed pallas_call overhead dominates; this kernel is
    # intended for large RL batches where the streamed, pipelined tiles pay off.

    key = jax.random.PRNGKey(0)
    k_obs, k_params = jax.random.split(key)
    obs = jax.random.normal(k_obs, (batch, obs_size), jnp.float32)
    w1, b1, w2, b2 = init_params(k_params, obs_size, n_actions, hidden_size)

    out = mlp_critic_forward(obs, w1, b1, w2, b2)
    jax.block_until_ready(out)

    # Reference with matching precision (bf16 MXU operands, f32 accumulation).
    h_ref = jnp.dot(obs.astype(jnp.bfloat16), w1.T.astype(jnp.bfloat16),
                    preferred_element_type=jnp.float32) + b1
    h_ref = jnp.maximum(h_ref, 0.0)
    ref = jnp.dot(h_ref.astype(jnp.bfloat16), w2.T.astype(jnp.bfloat16),
                  preferred_element_type=jnp.float32) + b2

    assert out.shape == (batch, n_actions)
    assert jnp.allclose(out, ref, atol=1e-2, rtol=1e-2)

    print("KERNEL_OK")
</pallas_src>

<mosaic_0001>
module attributes {stable_mosaic.version = 11 : i64} {
  func.func @mlp_critic_kernel(%arg0: i32, %arg1: memref<16x128xbf16, #tpu.memory_space<vmem>>, %arg2: memref<32x16xbf16, #tpu.memory_space<vmem>>, %arg3: memref<32x1xf32, #tpu.memory_space<vmem>>, %arg4: memref<4x32xbf16, #tpu.memory_space<vmem>>, %arg5: memref<4x1xf32, #tpu.memory_space<vmem>>, %arg6: memref<4x128xf32, #tpu.memory_space<vmem>>) attributes {dimension_semantics = [#tpu.dimension_semantics<parallel>], iteration_bounds = array<i64: 1>, scalar_prefetch = 0 : i64, scratch_operands = 0 : i64, tpu.core_type = #tpu.core_type<tc>, window_params = [{transform_indices = @transform_0, window_bounds = array<i64: 16, 128>}, {pipeline_mode = #tpu.pipeline_mode<synchronous>, transform_indices = @transform_1, window_bounds = array<i64: 32, 16>}, {pipeline_mode = #tpu.pipeline_mode<synchronous>, transform_indices = @transform_2, window_bounds = array<i64: 32, 1>}, {pipeline_mode = #tpu.pipeline_mode<synchronous>, transform_indices = @transform_3, window_bounds = array<i64: 4, 32>}, {pipeline_mode = #tpu.pipeline_mode<synchronous>, transform_indices = @transform_4, window_bounds = array<i64: 4, 1>}, {transform_indices = @transform_5, window_bounds = array<i64: 4, 128>}]} {
    %c0 = arith.constant 0 : index
    %c0_0 = arith.constant 0 : index
    %0 = vector.load %arg2[%c0, %c0_0] : memref<32x16xbf16, #tpu.memory_space<vmem>>, vector<32x16xbf16>
    %c0_1 = arith.constant 0 : index
    %c0_2 = arith.constant 0 : index
    %1 = vector.load %arg1[%c0_1, %c0_2] : memref<16x128xbf16, #tpu.memory_space<vmem>>, vector<16x128xbf16>
    %cst = arith.constant dense<0.000000e+00> : vector<32x128xf32>
    %2 = tpu.matmul %0, %1, %cst {dimension_numbers = #tpu.dot_dimension_numbers<[1], [0], [0], [1], [0, 0, 1, 1], [], []>} : vector<32x16xbf16>, vector<16x128xbf16>, vector<32x128xf32> -> vector<32x128xf32>
    %c0_3 = arith.constant 0 : index
    %c0_4 = arith.constant 0 : index
    %3 = vector.load %arg3[%c0_3, %c0_4] : memref<32x1xf32, #tpu.memory_space<vmem>>, vector<32x1xf32>
    %4 = vector.broadcast %3 : vector<32x1xf32> to vector<32x128xf32>
    %5 = arith.addf %2, %4 : vector<32x128xf32>
    %cst_5 = arith.constant 0.000000e+00 : f32
    %6 = vector.broadcast %cst_5 : f32 to vector<32x128xf32>
    %7 = arith.maximumf %5, %6 : vector<32x128xf32>
    %c0_6 = arith.constant 0 : index
    %c0_7 = arith.constant 0 : index
    %8 = vector.load %arg4[%c0_6, %c0_7] : memref<4x32xbf16, #tpu.memory_space<vmem>>, vector<4x32xbf16>
    %9 = arith.truncf %7 : vector<32x128xf32> to vector<32x128xbf16>
    %cst_8 = arith.constant dense<0.000000e+00> : vector<4x128xf32>
    %10 = tpu.matmul %8, %9, %cst_8 {dimension_numbers = #tpu.dot_dimension_numbers<[1], [0], [0], [1], [0, 0, 1, 1], [], []>} : vector<4x32xbf16>, vector<32x128xbf16>, vector<4x128xf32> -> vector<4x128xf32>
    %c0_9 = arith.constant 0 : index
    %c0_10 = arith.constant 0 : index
    %11 = vector.load %arg5[%c0_9, %c0_10] : memref<4x1xf32, #tpu.memory_space<vmem>>, vector<4x1xf32>
    %12 = vector.broadcast %11 : vector<4x1xf32> to vector<4x128xf32>
    %13 = arith.addf %10, %12 : vector<4x128xf32>
    %c0_11 = arith.constant 0 : index
    %c0_12 = arith.constant 0 : index
    %14 = vector.load %arg6[%c0_11, %c0_12] : memref<4x128xf32, #tpu.memory_space<vmem>>, vector<4x128xf32>
    tpu.vector_store %arg6[%c0_11, %c0_12], %13 {strides = array<i32>} : memref<4x128xf32, #tpu.memory_space<vmem>>, vector<4x128xf32>,
    return
  }
  func.func @transform_0(%arg0: i32) -> (i32, i32) {
    %c0_i32 = arith.constant 0 : i32
    %c0_i32_0 = arith.constant 0 : i32
    return %c0_i32, %arg0 : i32, i32
  }
  func.func @transform_1(%arg0: i32) -> (i32, i32) {
    %c0_i32 = arith.constant 0 : i32
    %c0_i32_0 = arith.constant 0 : i32
    %c0_i32_1 = arith.constant 0 : i32
    return %c0_i32, %c0_i32_0 : i32, i32
  }
  func.func @transform_2(%arg0: i32) -> (i32, i32) {
    %c0_i32 = arith.constant 0 : i32
    %c0_i32_0 = arith.constant 0 : i32
    %c0_i32_1 = arith.constant 0 : i32
    return %c0_i32, %c0_i32_0 : i32, i32
  }
  func.func @transform_3(%arg0: i32) -> (i32, i32) {
    %c0_i32 = arith.constant 0 : i32
    %c0_i32_0 = arith.constant 0 : i32
    %c0_i32_1 = arith.constant 0 : i32
    return %c0_i32, %c0_i32_0 : i32, i32
  }
  func.func @transform_4(%arg0: i32) -> (i32, i32) {
    %c0_i32 = arith.constant 0 : i32
    %c0_i32_0 = arith.constant 0 : i32
    %c0_i32_1 = arith.constant 0 : i32
    return %c0_i32, %c0_i32_0 : i32, i32
  }
  func.func @transform_5(%arg0: i32) -> (i32, i32) {
    %c0_i32 = arith.constant 0 : i32
    %c0_i32_0 = arith.constant 0 : i32
    return %c0_i32, %arg0 : i32, i32
  }
}

</mosaic_0001>

<bundles_post_ra>
// kernel: tpu_custom_call.1
= control target key start
LH: loop header
LB: loop body
LE: loop exit
PB: predicated region body
PF: predicated region fallthrough
CT: control target
= control target key end

     0   :  { %vm68_vm0 = vcmask 130048   ;;  %v255_v3 = vmov 0   ;;  %s328_s0 = inlined_call_operand.vmem [shape: bf16[16,128], index: 0, kind: input, shape index: {}]   ;;  %s329_s1 = inlined_call_operand.vmem [shape: bf16[32,16], index: 1, kind: input, shape index: {}]   ;;  %s330_s2 = inlined_call_operand.vmem [shape: f32[32,1], index: 2, kind: input, shape index: {}]   ;;  %s331_s3 = inlined_call_operand.vmem [shape: bf16[4,32], index: 3, kind: input, shape index: {}]   ;;  %s332_s4 = inlined_call_operand.vmem [shape: f32[4,1], index: 4, kind: input, shape index: {}]   ;;  %s333_s5 = inlined_call_operand.hbm [shape: f32[4,128], index: 5, kind: output, shape index: {}]  }
   0x1   :  { %v228_v0 = vld [vmem:[%s328_s0] sm:$0xff]   ;;  %v230_v2 = vld [vmem:[%s329_s1 + $0x8] sm:$0xff]   ;;  %226 = vset.pattern.permute.xlu0 %v255_v3  ;;  %v30_v5 = vld [vmem:[%s330_s2 + $0x10] sm:$0xff]  ;;  %227 = vset.pattern.permute.xlu1 %v255_v3 }
   0x2   :  { %v229_v1 = vld [vmem:[%s329_s1] sm:$0xff]   ;;  %208 = vmatprep.subr.bf16.mxu0 %v228_v0 }
   0x3   :  { %209 = vmatpush3.bf16.msra.mxu0 %v228_v0  ;;  %210 = vmatprep.mubr.msk.bf16.mxu0 %vm68_vm0, %v229_v1  ;;  %v28_v4 = vld [vmem:[%s330_s2] sm:$0xff] }
   0x4   :  { %34 = vperm.xlu0 %226, %v28_v4  }
   0x5   :  { %10 = vsyncpa [#allocation3], 0  ;;  %v29_v6 = vld [vmem:[%s330_s2 + $0x8] sm:$0xff]  ;;  %44 = vperm.xlu1 %227, %v30_v5   ;;  %v31_v7 = vld [vmem:[%s330_s2 + $0x18] sm:$0xff]  ;;  %v256_v9 = vmov 0.0   ;;  %vm257_vm1 = vmmov 0  }
   0x6   :  { %211 = vmatmul.mubr.msk.bf16.vlgmr.msra.gmra.mrb[0].mxu0 %vm68_vm0, %v230_v2  ;;  %v131_v8 = vld [vmem:[%s332_s4] sm:$0xf]  ;;  %214 = vmatprep.subr.bf16.mxu1 %v256_v9  ;;  %vm137_vm2 = vcmask 261120   ;;  %s258_s7 = smov [#allocation2]  }
   0x7   :  { %218 = vmatprep.mubr.msk.bf16.mxu1 %vm257_vm1, %v256_v9  ;;  %v128_v28 = vld [vmem:[%s331_s3] sm:$0x3]  ;;  %s188_s8 = sshll.u32 %s258_s7, 4  ;;  %s189_s8 = int_to_ptr.vmem [resolvable:$true] %s188_s8 }
   0x8   :  { %39 = vperm.xlu0 %226, %v29_v6   ;;  %s231_s9 = scalar_lea.vmem %s189_s8, 64  ;;  %p236_p1 = scmp.lt.s32.totalorder %s189_s8, %s189_s8 }
   0x9   :  { %49 = vperm.xlu1 %227, %v31_v7   ;;  %p232_p0 = scmp.ne.s32.totalorder %s189_s8, %s231_s9  ;;  %p237_p2 = scmp.lt.s32.totalorder %s231_s9, %s231_s9 }
   0xb   :  { %p238_p3 = por %p237_p2, %p236_p1 }
   0xc   :  { %134 = vperm.xlu0 %226, %v131_v8  }
   0xd   :  { %p239_p4 = pnand %p238_p3, %p232_p0 }
  0x83   :  { %v35_v11 = vpop.permute.xlu0 %34 }
  0x84   :  { %v45_v10 = vpop.permute.xlu1 %44 }
  0x87   :  { %v40_v18 = vpop.permute.xlu0 %39 }
  0x88   :  { %v50_v13 = vpop.permute.xlu1 %49 }
  0x8b   :  { %v135_v29 = vpop.permute.xlu0 %134 }
  0xd9   :  { %v212_v12 = vpop.f32.mrb[0].mxu0 }
  0xda   :  { %v118_v14 = vadd.f32 %v212_v12, %v45_v10  ;;  %v109_v15 = vpop.f32.mrb[1].mxu0 }
  0xdb   :  { %v110_v16 = vadd.f32 %v109_v15, %v35_v11  ;;  %v213_v17 = vpop.f32.mrb[2].mxu0 }
  0xdc   :  { %v121_v19 = vadd.f32 %v213_v17, %v50_v13  ;;  %v112_v20 = vpop.f32.mrb[3].mxu0  ;;  %v126_v22 = vmax.f32 %v118_v14, 0.0 }
  0xdd   :  { %v113_v21 = vadd.f32 %v112_v20, %v40_v18  ;;  %v124_v24 = vmax.f32 %v110_v16, 0.0 }
  0xde   :  { %v127_v23 = vmax.f32 %v121_v19, 0.0 }
  0xdf   :  { %v125_v25 = vmax.f32 %v113_v21, 0.0 }
  0xe0   :  { %v130_v26 = vpack.c.bf16 %v127_v23, %v126_v22 }
  0xe1   :  { %v129_v27 = vpack.c.bf16 %v125_v25, %v124_v24 }
  0xe3   :  { %215 = vmatpush3.bf16.msra.mxu1 %v129_v27 }
  0xe4   :  { %216 = vmatprep.subr.bf16.mxu1 %v256_v9 }
  0xe7   :  { %217 = vmatpush3.bf16.msra.mxu1 %v130_v26 }
  0xea   :  { %219 = vmatmul.mubr.msk.bf16.vlgmr.msra.gmra.mrb[0].mxu1 %vm137_vm2, %v128_v28 }
 0x1bd   :  { %v175_v30 = vpop.f32.mrb[0].mxu1 }
 0x1be   :  { %v176_v31 = vadd.f32 %v175_v30, %v135_v29  ;;  %v220_v32 = vpop.f32.mrb[1].mxu1 }
 0x1bf   :  { %v178_v33 = vpop.f32.mrb[2].mxu1 }
 0x1c0   :  { %181 = vst [vmem:[#allocation2] sm:$0xf] %v176_v31  ;;  %v221_v34 = vpop.f32.mrb[3].mxu1 }
 0x1c1   :  { %242 = shalt.err (!%p239_p4)
}
 0x1c2   :  { %s243_s11 = scalar_lea.hbm %s333_s5, 64 }
 0x1c3   :  { %p244_p5 = scmp.ne.s32.totalorder %s333_s5, %s243_s11  ;;  %p247_p6 = scmp.lt.u32.totalorder %s243_s11, %s333_s5 }
 0x1c5   :  { %p249_p7 = pnand %p247_p6, %p244_p5 }
 0x1c7   :  { %252 = shalt.err (!%p249_p7)
}
 0x1c8   :  { %191 = dma.vmem_to_hbm [thread:$0]  %s189_s8, 64, %s333_s5, [#allocation3]  }
 0x1c9   :  { %253 = dma.done.wait [#allocation3], 64  }
 0x1ca   :  { %254 = vsyncadd [#allocation3], 4294967232 }
 0x1cb   :  { %195 = vsyncpa [#allocation3], 1 }

</bundles_post_ra>
